<compile_context>
chip_gen: v5e
topology: v5e:2x2
jax: 0.10.0
libtpu: 0.0.40
codegen_flags: <defaults>
</compile_context>

<pallas_src>
import math
import jax
import jax.numpy as jnp
from jax.experimental import pallas as pl
from jax.experimental.pallas import tpu as pltpu


def _scale_kernel(x_ref, w_ref, o_ref):
    # w_ref is either (rblk, 1) (per-row scale) or (1, lblk) (per-lane scale);
    # both broadcast against the (rblk, lblk) x tile on the VPU. f32 math is
    # free under the DMA and safe on v5e (no bf16 VALU); the product is cast to
    # the promoted output dtype.
    o_ref[...] = (x_ref[...].astype(jnp.float32) * w_ref[...]).astype(o_ref.dtype)


def _round_up(n, m):
    return -(-n // m) * m


def _vmem_capacity_bytes(default=64 << 20):
    """Physical VMEM per TensorCore; conservative (v7x-sized) default."""
    try:
        cap = int(getattr(pltpu.get_tpu_info(), "vmem_capacity_bytes", 0))
        return cap if cap > 0 else default
    except Exception:
        return default


def _pick_tile(dim, unit, max_elems):
    """Tile size along one axis, hard-capped at `max_elems` elements.

    Returns either the full extent (always legal as a block dim, no tail), a
    divisor of `dim` that is a multiple of `unit` within 2x of the cap (no
    masked tail, chunks stay large/contiguous), or the cap itself with a
    cdiv masked-tail block.
    """
    cap = max(unit, (max_elems // unit) * unit)
    if dim <= cap:
        return dim
    d = cap
    lo = max(unit, cap // 2)
    while d >= lo:
        if dim % d == 0:
            return d
        d -= unit
    return cap


def _pick_blocks(rows, cols, itemsize, target_block_bytes):
    """Lane-dense, byte-capped block shape for a (rows, cols) array.

    `cols` is guaranteed (by the wrapper) to be a multiple of 128. The returned
    block always satisfies rblk * lblk * itemsize <= max(target, 8*128*itemsize).
    """
    budget = max(int(target_block_bytes), 8 * 128 * itemsize)
    # Lanes first: prefer full rows (one contiguous HBM chunk per block),
    # otherwise the largest 128-multiple that fits at >= 8 sublanes.
    lblk = _pick_tile(cols, 128, budget // (8 * itemsize))
    # Then rows: fill the remaining budget in multiples of 8.
    rblk = _pick_tile(rows, 8, budget // (lblk * itemsize))
    return rblk, lblk


def feature_scaling(x, weight, *, target_block_bytes=None, min_pallas_bytes=4 << 20):
    """x: (N, C, H, W); weight: (C, 1, 1) -> x * weight broadcast over (H, W)."""
    N, C, H, W = x.shape
    assert weight.shape == (C, 1, 1)
    # Match torch type promotion (e.g. bf16 x * f32 weight -> f32 output).
    out_dtype = jnp.result_type(x.dtype, weight.dtype)

    # Small-problem fallback: fixed pallas_call/grid overhead dominates tiny
    # inputs; a fused XLA broadcast-mul is strictly faster and fuses upstream.
    if x.size * x.dtype.itemsize < min_pallas_bytes:
        return (x * weight.reshape(1, C, 1, 1)).astype(out_dtype)

    HW = H * W
    R = N * C
    w_flat = weight.reshape(C).astype(jnp.float32)

    # Lane-dense 2-D layout (last dim a multiple of 128 -> unmasked stores).
    pad = 0
    if HW % 128 == 0:
        rows, cols, rowwise = R, HW, True
        x2 = x.reshape(rows, cols)
        w2 = jnp.broadcast_to(w_flat[None, :], (N, C)).reshape(rows, 1)
    elif (C * HW) % 128 == 0:
        rows, cols, rowwise = N, C * HW, False
        x2 = x.reshape(rows, cols)
        w2 = jnp.repeat(w_flat, HW).reshape(1, cols)
    else:
        cols = _round_up(HW, 128)
        pad = cols - HW
        rows, rowwise = R, True
        x2 = jnp.pad(x.reshape(R, HW), ((0, 0), (0, pad)))
        w2 = jnp.broadcast_to(w_flat[None, :], (N, C)).reshape(rows, 1)

    # Generation-aware tile target and VMEM budget (v7x has only 64 MiB per TC).
    vmem_cap = _vmem_capacity_bytes()
    vmem_budget = 3 * vmem_cap // 4  # leave ~25% headroom for compiler scratch
    if target_block_bytes is None:
        target_block_bytes = (2 << 20) if vmem_cap <= (64 << 20) else (4 << 20)
    target_block_bytes = max(8 * 128 * 4, min(int(target_block_bytes), vmem_budget // 8))

    itemsize = max(x2.dtype.itemsize, jnp.dtype(out_dtype).itemsize)
    rblk, lblk = _pick_blocks(rows, cols, itemsize, target_block_bytes)
    nrow = pl.cdiv(rows, rblk)
    ncol = pl.cdiv(cols, lblk)

    # Grid: weight-invariant axis stays fastest; collapse a degenerate leading
    # axis so the megacore-sharded axis has >= 2 blocks (otherwise one of
    # v7x's two TensorCores would idle).
    w_block = (rblk, 1) if rowwise else (1, lblk)
    if nrow == 1:
        grid = (ncol,)
        x_map = lambda j: (0, j)
        w_map = (lambda j: (0, 0)) if rowwise else (lambda j: (0, j))
    elif ncol == 1:
        grid = (nrow,)
        x_map = lambda i: (i, 0)
        w_map = (lambda i: (i, 0)) if rowwise else (lambda i: (0, 0))
    else:
        grid = (nrow, ncol)
        x_map = lambda i, j: (i, j)
        w_map = (lambda i, j: (i, 0)) if rowwise else (lambda i, j: (0, j))

    # VMEM: double-buffered in+out blocks plus the lane/sublane-padded weight
    # tiles, with headroom, hard-capped at ~75% of physical VMEM.
    block_bytes = rblk * lblk * (x2.dtype.itemsize + jnp.dtype(out_dtype).itemsize)
    w_tile_bytes = (_round_up(rblk, 8) * 128 if rowwise else 8 * lblk) * 4
    needed = 2 * block_bytes + 2 * w_tile_bytes
    vmem_limit = int(min(vmem_budget, max(needed + (16 << 20), 16 << 20)))

    out2 = pl.pallas_call(
        _scale_kernel,
        out_shape=jax.ShapeDtypeStruct((rows, cols), out_dtype),
        grid=grid,
        in_specs=[
            pl.BlockSpec((rblk, lblk), x_map),
            pl.BlockSpec(w_block, w_map),
        ],
        out_specs=pl.BlockSpec((rblk, lblk), x_map),
        compiler_params=pltpu.CompilerParams(
            dimension_semantics=("parallel",) * len(grid),
            vmem_limit_bytes=vmem_limit,
        ),
        # Purely HBM-bandwidth bound: no deeper buffering, no MXU.
        # TODO(synk): input_output_aliases={0: 0} once callers can donate x.
    )(x2, w2)

    if pad:
        out2 = out2[:, :HW]
    return out2.reshape(N, C, H, W)


def init_weight(key, dim, dtype=jnp.float32):
    """Deterministic equivalent of kaiming_uniform_(a=sqrt(5)) on (dim,1,1).
    fan_in = 1, gain = sqrt(2/(1+5)), bound = gain*sqrt(3/fan_in) = 1 -> U(-1,1)."""
    fan_in = 1
    gain = math.sqrt(2.0 / (1.0 + 5.0))
    bound = gain * math.sqrt(3.0 / fan_in)
    return jax.random.uniform(key, (dim, 1, 1), dtype=dtype, minval=-bound, maxval=bound)


if __name__ == "__main__":
    # TODO(synk): use_dropout=True path (train-mode nn.Dropout) is omitted —
    # eval-mode dropout is identity, so forward semantics match in eval mode.
    key = jax.random.PRNGKey(0)

    def _check(shape, *, tb=None):
        n, c, h, w = shape
        kx, kw = jax.random.split(jax.random.fold_in(key, n * 1009 + c * 101 + h * 11 + w))
        x = jax.random.normal(kx, shape, dtype=jnp.float32)
        wgt = init_weight(kw, c)
        kwargs = dict(min_pallas_bytes=0)  # force the Pallas path for the test
        if tb is not None:
            kwargs["target_block_bytes"] = tb
        out = jax.block_until_ready(feature_scaling(x, wgt, **kwargs))
        ref = x * wgt.reshape(1, c, 1, 1)
        assert out.shape == x.shape
        assert jnp.allclose(out, ref, atol=1e-6, rtol=1e-6), shape

    _check((2, 4, 16, 16))                    # H*W % 128 == 0: per-row weight
    _check((2, 4, 8, 8))                      # C*H*W % 128 == 0: per-lane weight
    _check((2, 3, 7, 7))                      # awkward H*W: padded lane dim
    _check((1, 2, 32, 512), tb=64 << 10)      # 1-D lane grid (megacore-friendly)
    _check((2, 16, 32, 128), tb=64 << 10)     # 2-D grid, multiple blocks per axis

    # Small-problem fallback path (plain XLA broadcast multiply).
    kx, kw = jax.random.split(key)
    x_small = jax.random.normal(kx, (2, 4, 16, 16), dtype=jnp.float32)
    w_small = init_weight(kw, 4)
    out_small = jax.block_until_ready(feature_scaling(x_small, w_small))
    assert jnp.allclose(out_small, x_small * w_small.reshape(1, 4, 1, 1),
                        atol=1e-6, rtol=1e-6)

    print("KERNEL_OK")
</pallas_src>

<mosaic_0001>
module attributes {stable_mosaic.version = 11 : i64} {
  func.func @_scale_kernel(%arg0: i32, %arg1: memref<8x256xf32, #tpu.memory_space<vmem>>, %arg2: memref<8x1xf32, #tpu.memory_space<vmem>>, %arg3: memref<8x256xf32, #tpu.memory_space<vmem>>) attributes {dimension_semantics = [#tpu.dimension_semantics<parallel>], iteration_bounds = array<i64: 1>, scalar_prefetch = 0 : i64, scratch_operands = 0 : i64, tpu.core_type = #tpu.core_type<tc>, window_params = [{transform_indices = @transform_0, window_bounds = array<i64: 8, 256>}, {pipeline_mode = #tpu.pipeline_mode<synchronous>, transform_indices = @transform_1, window_bounds = array<i64: 8, 1>}, {transform_indices = @transform_2, window_bounds = array<i64: 8, 256>}]} {
    %c0 = arith.constant 0 : index
    %c0_0 = arith.constant 0 : index
    %0 = vector.load %arg1[%c0, %c0_0] : memref<8x256xf32, #tpu.memory_space<vmem>>, vector<8x256xf32>
    %c0_1 = arith.constant 0 : index
    %c0_2 = arith.constant 0 : index
    %1 = vector.load %arg2[%c0_1, %c0_2] : memref<8x1xf32, #tpu.memory_space<vmem>>, vector<8x1xf32>
    %2 = vector.broadcast %1 : vector<8x1xf32> to vector<8x256xf32>
    %3 = arith.mulf %0, %2 : vector<8x256xf32>
    %c0_3 = arith.constant 0 : index
    %c0_4 = arith.constant 0 : index
    %4 = vector.load %arg3[%c0_3, %c0_4] : memref<8x256xf32, #tpu.memory_space<vmem>>, vector<8x256xf32>
    tpu.vector_store %arg3[%c0_3, %c0_4], %3 {strides = array<i32>} : memref<8x256xf32, #tpu.memory_space<vmem>>, vector<8x256xf32>,
    return
  }
  func.func @transform_0(%arg0: i32) -> (i32, i32) {
    %c0_i32 = arith.constant 0 : i32
    %c0_i32_0 = arith.constant 0 : i32
    return %c0_i32, %arg0 : i32, i32
  }
  func.func @transform_1(%arg0: i32) -> (i32, i32) {
    %c0_i32 = arith.constant 0 : i32
    %c0_i32_0 = arith.constant 0 : i32
    %c0_i32_1 = arith.constant 0 : i32
    return %c0_i32, %c0_i32_0 : i32, i32
  }
  func.func @transform_2(%arg0: i32) -> (i32, i32) {
    %c0_i32 = arith.constant 0 : i32
    %c0_i32_0 = arith.constant 0 : i32
    return %c0_i32, %arg0 : i32, i32
  }
}

</mosaic_0001>

<bundles_post_ra>
// kernel: tpu_custom_call.1
= control target key start
LH: loop header
LB: loop body
LE: loop exit
PB: predicated region body
PF: predicated region fallthrough
CT: control target
= control target key end

     0   :  { %7 = vsyncpa [#allocation3], 0  ;;  %s138_s0 = inlined_call_operand.hbm [shape: f32[8,256], index: 0, kind: input, shape index: {}]   ;;  %s139_s1 = inlined_call_operand.vmem [shape: f32[8,1], index: 1, kind: input, shape index: {}]   ;;  %s140_s2 = inlined_call_operand.hbm [shape: f32[8,256], index: 2, kind: output, shape index: {}]  }
   0x1   :  { %8 = vsyncpa [#allocation4], 0  ;;  %s14_s11 = sshll.u32 %s138_s0, 4  ;;  %s111_s12 = smov [#allocation2]   ;;  %s15_s11 = int_to_ptr.hbm [resolvable:$true] %s14_s11 }
   0x2   :  { %s16_s13 = sshll.u32 %s111_s12, 4  ;;  %s17_s13 = int_to_ptr.vmem [resolvable:$true] %s16_s13 }
   0x3   :  { %19 = dma.hbm_to_vmem [thread:$0]  %s15_s11, 256, %s17_s13, [#allocation3]  }
   0x4   :  { %107 = dma.done.wait [#allocation3], 256  }
   0x5   :  { %108 = vsyncadd [#allocation3], 4294967040  ;;  %v112_v0 = vmov 0   ;;  %v28_v1 = vld [vmem:[%s139_s1] sm:$0xff]  ;;  %v27_v3 = vld [vmem:[#allocation2 + $0x8] sm:$0xff]  ;;  %s113_s16 = smov [#allocation5]  }
   0x6   :  { %58 = vset.pattern.permute.xlu0 %v112_v0  ;;  %v26_v2 = vld [vmem:[#allocation2] sm:$0xff]  ;;  %s43_s17 = sshll.u32 %s113_s16, 4  ;;  %s45_s19 = sshll.u32 %s140_s2, 4  ;;  %s44_s17 = int_to_ptr.vmem [resolvable:$true] %s43_s17  ;;  %s46_s19 = int_to_ptr.hbm [resolvable:$true] %s45_s19 }
   0x7   :  { %31 = vperm.xlu0 %58, %v28_v1  }
  0x79   :  { %v32_v4 = vpop.permute.xlu0 %31 }
  0x7a   :  { %v34_v5 = vmul.f32 %v32_v4, %v26_v2  ;;  %v35_v6 = vmul.f32 %v32_v4, %v27_v3 }
  0x7c   :  { %36 = vst [vmem:[#allocation5] sm:$0xff] %v34_v5 }
  0x7d   :  { %37 = vst [vmem:[#allocation5 + $0x8] sm:$0xff] %v35_v6 }
  0x7e   :  { %48 = dma.vmem_to_hbm [thread:$0]  %s44_s17, 256, %s46_s19, [#allocation4]  }
  0x7f   :  { %109 = dma.done.wait [#allocation4], 256  }
  0x80   :  { %110 = vsyncadd [#allocation4], 4294967040 }
  0x81   :  { %53 = vsyncpa [#allocation3], 1 }
  0x82   :  { %54 = vsyncpa [#allocation4], 1 }

</bundles_post_ra>
